<compile_context>
chip_gen: v7x
topology: tpu7x:2x2x1
jax: 0.10.0
libtpu: 0.0.40
codegen_flags: <defaults>
</compile_context>

<pallas_src>
import jax
import jax.numpy as jnp
from jax.experimental import pallas as pl
from jax.experimental.pallas import tpu as pltpu

SUBLANES = 8            # f32 sublanes per vreg
LANES = 128             # lanes per vreg
MAX_TILE_COLS = 65536   # 8*65536 = 524288 batch elems / step  (~6 MiB of blocks)
MIN_SPLIT_COLS = 4096   # ~32K batch elems per half: minimum worth a 2-way split


def affine_kernel(coef_ref, xt_ref, o_ref):
    """coef_ref: SMEM (3,) f32 = [w0, w1, b];
    xt_ref: VMEM (2, 8, C) f32;  o_ref: VMEM (8, C) f32."""
    w0 = coef_ref[0]
    w1 = coef_ref[1]
    b = coef_ref[2]
    x0 = xt_ref[0]                           # (8, C) sublane- and lane-dense slab
    x1 = xt_ref[1]                           # (8, C)
    o_ref[...] = x0 * w0 + x1 * w1 + b       # pure VPU FMAs, unmasked dense store


def _round_up(n: int, m: int) -> int:
    return ((n + m - 1) // m) * m


def _tensorcores_per_chip() -> int:
    """Best-effort TensorCore count per chip (v7x has 2). Falls back to 1."""
    try:
        info = pltpu.get_tpu_info()
    except Exception:
        return 1
    for name in ("tensorcores_per_chip", "num_tensorcores", "num_cores",
                 "cores_per_chip"):
        v = getattr(info, name, None)
        if isinstance(v, int) and 1 <= v <= 8:
            return v
    return 1


def time_series_model_forward(x, params, *, max_tile_cols=MAX_TILE_COLS,
                              input_buffers=None):
    """x: (B, 2) float32 -> (B, 1) float32 (same semantics as the PyTorch module)."""
    w1, b1, w2, b2, w3, b3 = params
    B = x.shape[0]

    # ---- Fold the affine chain once (the module has no nonlinearities). ----
    w_eff = w1 @ w2 @ w3                     # (2, 1)
    b_eff = (b1 @ w2 + b2) @ w3 + b3         # (1, 1)
    coef = jnp.concatenate(
        [w_eff.reshape(-1), b_eff.reshape(-1)]).astype(jnp.float32)   # (3,)

    # ---- Dense (8, cols) layout: batch spread over sublanes AND lanes. ----
    b_pad = _round_up(B, SUBLANES * LANES)   # multiple of 1024
    cols = b_pad // SUBLANES                 # multiple of 128

    tile_c = min(cols, max_tile_cols)
    if (_tensorcores_per_chip() >= 2 and cols <= max_tile_cols
            and cols >= 2 * MIN_SPLIT_COLS):
        # Dual-TensorCore chip (v7x): 2-way megacore split, only when each half
        # still moves enough bytes to amortize the per-step overhead.
        tile_c = _round_up(pl.cdiv(cols, 2), LANES)
    num_tiles = pl.cdiv(cols, tile_c)        # trailing block may be partial

    # Layout plumbing (one fused XLA pass under jit): transpose, tail-pad, reshape.
    xt = x.astype(jnp.float32).T             # (2, B)
    if b_pad != B:
        xt = jnp.pad(xt, ((0, 0), (0, b_pad - B)))
    xt = xt.reshape(2, SUBLANES, cols)       # free row-major reshape

    x_spec_kwargs = {}
    if input_buffers is not None:            # optional deeper pipelining to sweep
        x_spec_kwargs["pipeline_mode"] = pl.Buffered(input_buffers)

    out = pl.pallas_call(
        affine_kernel,
        out_shape=jax.ShapeDtypeStruct((SUBLANES, cols), jnp.float32),
        grid_spec=pltpu.PrefetchScalarGridSpec(
            num_scalar_prefetch=0,
            grid=(num_tiles,),
            in_specs=[
                # Three folded coefficients live in SMEM (no VMEM DMA machinery).
                pl.BlockSpec(memory_space=pltpu.MemorySpace.SMEM),
                # Dense input tile: last two dims = (8, multiple of 128).
                pl.BlockSpec((2, SUBLANES, tile_c), lambda i: (0, 0, i),
                             **x_spec_kwargs),
            ],
            out_specs=pl.BlockSpec((SUBLANES, tile_c), lambda i: (0, i)),
        ),
        compiler_params=pltpu.CompilerParams(
            dimension_semantics=("parallel",),
        ),
    )(coef, xt)

    # Free reshape back to flat batch order, drop padding, PyTorch-shaped (B, 1).
    return out.reshape(b_pad)[:B][:, None]


def init_params(key):
    """Deterministic init mirroring PyTorch nn.Linear default (U(-k, k), k=1/sqrt(fan_in)).
    Weights stored as (in, out)."""
    def linear(key, fan_in, fan_out):
        kw, kb = jax.random.split(key)
        bound = 1.0 / jnp.sqrt(fan_in)
        w = jax.random.uniform(kw, (fan_in, fan_out), jnp.float32, -bound, bound)
        b = jax.random.uniform(kb, (1, fan_out), jnp.float32, -bound, bound)
        return w, b

    k1, k2, k3 = jax.random.split(key, 3)
    w1, b1 = linear(k1, 2, 12)
    w2, b2 = linear(k2, 12, 8)
    w3, b3 = linear(k3, 8, 1)
    return (w1, b1, w2, b2, w3, b3)


def reference_forward(x, params):
    """Unfused 3-layer chain, exactly mirroring the PyTorch forward."""
    w1, b1, w2, b2, w3, b3 = params
    h = x @ w1 + b1
    h = h @ w2 + b2
    return h @ w3 + b3


if __name__ == "__main__":
    key = jax.random.PRNGKey(0)
    kx, kp = jax.random.split(key)

    B = 1000  # deliberately NOT a multiple of 1024: exercises the tail-pad path
    x = jax.random.normal(kx, (B, 2), jnp.float32)
    params = init_params(kp)

    fwd = jax.jit(time_series_model_forward)
    out = jax.block_until_ready(fwd(x, params))

    ref = reference_forward(x, params)
    assert out.shape == (B, 1)
    assert jnp.allclose(out, ref, atol=1e-4, rtol=1e-4), "mismatch vs reference"

    print("KERNEL_OK")
</pallas_src>

<mosaic_0001>
module attributes {stable_mosaic.version = 11 : i64} {
  func.func @affine_kernel(%arg0: i32, %arg1: memref<3xf32, #tpu.memory_space<smem>>, %arg2: memref<2x8x128xf32, #tpu.memory_space<vmem>>, %arg3: memref<8x128xf32, #tpu.memory_space<vmem>>) attributes {dimension_semantics = [#tpu.dimension_semantics<parallel>], iteration_bounds = array<i64: 1>, scalar_prefetch = 0 : i64, scratch_operands = 0 : i64, tpu.core_type = #tpu.core_type<tc>, window_params = [{transform_indices = @transform_0, window_bounds = array<i64: 3>}, {transform_indices = @transform_1, window_bounds = array<i64: 2, 8, 128>}, {transform_indices = @transform_2, window_bounds = array<i64: 8, 128>}]} {
    %c0 = arith.constant 0 : index
    %0 = memref.load %arg1[%c0] : memref<3xf32, #tpu.memory_space<smem>>
    %c1 = arith.constant 1 : index
    %1 = memref.load %arg1[%c1] : memref<3xf32, #tpu.memory_space<smem>>
    %c2 = arith.constant 2 : index
    %2 = memref.load %arg1[%c2] : memref<3xf32, #tpu.memory_space<smem>>
    %c0_0 = arith.constant 0 : index
    %c0_1 = arith.constant 0 : index
    %c0_2 = arith.constant 0 : index
    %3 = vector.load %arg2[%c0_0, %c0_1, %c0_2] : memref<2x8x128xf32, #tpu.memory_space<vmem>>, vector<1x8x128xf32>
    %4 = vector.shape_cast %3 : vector<1x8x128xf32> to vector<8x128xf32>
    %c1_3 = arith.constant 1 : index
    %c0_4 = arith.constant 0 : index
    %c0_5 = arith.constant 0 : index
    %5 = vector.load %arg2[%c1_3, %c0_4, %c0_5] : memref<2x8x128xf32, #tpu.memory_space<vmem>>, vector<1x8x128xf32>
    %6 = vector.shape_cast %5 : vector<1x8x128xf32> to vector<8x128xf32>
    %7 = vector.broadcast %0 : f32 to vector<8x128xf32>
    %8 = arith.mulf %4, %7 : vector<8x128xf32>
    %9 = vector.broadcast %1 : f32 to vector<8x128xf32>
    %10 = arith.mulf %6, %9 : vector<8x128xf32>
    %11 = arith.addf %8, %10 : vector<8x128xf32>
    %12 = vector.broadcast %2 : f32 to vector<8x128xf32>
    %13 = arith.addf %11, %12 : vector<8x128xf32>
    %c0_6 = arith.constant 0 : index
    %c0_7 = arith.constant 0 : index
    %14 = vector.load %arg3[%c0_6, %c0_7] : memref<8x128xf32, #tpu.memory_space<vmem>>, vector<8x128xf32>
    tpu.vector_store %arg3[%c0_6, %c0_7], %13 {strides = array<i32>} : memref<8x128xf32, #tpu.memory_space<vmem>>, vector<8x128xf32>,
    return
  }
  func.func @transform_0(%arg0: i32) -> i32 {
    %c0_i32 = arith.constant 0 : i32
    %c0_i32_0 = arith.constant 0 : i32
    return %c0_i32 : i32
  }
  func.func @transform_1(%arg0: i32) -> (i32, i32, i32) {
    %c0_i32 = arith.constant 0 : i32
    %c0_i32_0 = arith.constant 0 : i32
    %c0_i32_1 = arith.constant 0 : i32
    return %c0_i32, %c0_i32_0, %arg0 : i32, i32, i32
  }
  func.func @transform_2(%arg0: i32) -> (i32, i32) {
    %c0_i32 = arith.constant 0 : i32
    %c0_i32_0 = arith.constant 0 : i32
    return %c0_i32, %arg0 : i32, i32
  }
}

</mosaic_0001>

<bundles_post_ra>
// kernel: time_series_model_forward.1
= control target key start
LH: loop header
LB: loop body
LE: loop exit
PB: predicated region body
PF: predicated region fallthrough
CT: control target
= control target key end

     0   :  { %7 = vsyncpa [#allocation4], 0  ;;  %s135_s0 = inlined_call_operand.vmem [shape: f32[3], index: 0, kind: input, shape index: {}]   ;;  %s136_s1 = inlined_call_operand.vmem [shape: f32[2,8,128], index: 1, kind: input, shape index: {}]   ;;  %s137_s2 = inlined_call_operand.hbm [shape: f32[8,128], index: 2, kind: output, shape index: {}]  }
   0x1   :  { %8 = vsyncpa [#allocation3], 0  ;;  %s15_s11 = sshll.u32 %s135_s0, 4  ;;  %s16_s11 = int_to_ptr.vmem [resolvable:$true] %s15_s11 }
   0x2   :  { %s59_s12 = scalar_lea.vmem %s16_s11, 16  ;;  %p64_p1 = scmp.lt.s32.totalorder %s16_s11, %s16_s11 }
   0x3   :  { %p60_p0 = scmp.ne.s32.totalorder %s16_s11, %s59_s12  ;;  %p65_p2 = scmp.lt.s32.totalorder %s59_s12, %s59_s12 }
   0x5   :  { %p66_p3 = por %p65_p2, %p64_p1 }
   0x7   :  { %p67_p4 = pnand %p66_p3, %p60_p0 }
   0x9   :  { %70 = shalt.err (!%p67_p4)
}
   0xa   :  { %s97_s13 = smov [#allocation2]  }
   0xb   :  { %18 = dma.vmem_to_smem %s16_s11, 16, %s97_s13, [#allocation4]  }
   0xc   :  { %93 = dma.done.wait [#allocation4], 16  }
   0xd   :  { %94 = vsyncadd [#allocation4], 4294967280 }
   0xe   :  { %24 = sfence }
   0xf   :  { %s25_s14 = sld [smem:[#allocation2]]  ;;  %s54_s15 = sld [smem:[#allocation2 + $0x1]]  ;;  %v28_v0 = vld [vmem:[%s136_s1] sm:$0xff]  ;;  %v56_v1 = vld [vmem:[%s136_s1 + $0x8] sm:$0xff] }
  0x10   :  { %s55_s16 = sld [smem:[#allocation2 + $0x2]]  ;;  %s98_s20 = smov [#allocation5]  }
  0x11   :  { %s45_s21 = sshll.u32 %s98_s20, 4  ;;  %s46_s21 = int_to_ptr.vmem [resolvable:$true] %s45_s21 }
  0x12   :  { %s71_s22 = scalar_lea.vmem %s46_s21, 128  ;;  %p76_p6 = scmp.lt.s32.totalorder %s46_s21, %s46_s21 }
  0x13   :  { %p72_p5 = scmp.ne.s32.totalorder %s46_s21, %s71_s22  ;;  %p77_p7 = scmp.lt.s32.totalorder %s71_s22, %s71_s22 }
  0x15   :  { %v31_v2 = vstv %s25_s14  ;;  %v33_v3 = vstv %s54_s15  ;;  %p78_p8 = por %p77_p7, %p76_p6 }
  0x16   :  { %v32_v4 = vmul.f32 %v31_v2, %v28_v0  ;;  %v34_v5 = vmul.f32 %v56_v1, %v33_v3  ;;  %v36_v6 = vstv %s55_s16 }
  0x17   :  { %p79_p9 = pnand %p78_p8, %p72_p5 }
  0x18   :  { %v35_v7 = vadd.f32 %v34_v5, %v32_v4 }
  0x1a   :  { %v37_v8 = vadd.f32 %v36_v6, %v35_v7 }
  0x1c   :  { %38 = vst [vmem:[#allocation5] sm:$0xff] %v37_v8 }
  0x1d   :  { %82 = shalt.err (!%p79_p9)
}
  0x1e   :  { %s83_s24 = scalar_lea.hbm %s137_s2, 128 }
  0x1f   :  { %p84_p10 = scmp.ne.s32.totalorder %s137_s2, %s83_s24  ;;  %p87_p11 = scmp.lt.u32.totalorder %s83_s24, %s137_s2 }
  0x21   :  { %p89_p12 = pnand %p87_p11, %p84_p10 }
  0x23   :  { %92 = shalt.err (!%p89_p12)
}
  0x24   :  { %48 = dma.vmem_to_hbm [thread:$0]  %s46_s21, 128, %s137_s2, [#allocation3]  }
  0x25   :  { %95 = dma.done.wait [#allocation3], 128  }
  0x26   :  { %96 = vsyncadd [#allocation3], 4294967168 }
  0x27   :  { %52 = vsyncpa [#allocation3], 1 }
  0x28   :  { %53 = vsyncpa [#allocation4], 1 }

</bundles_post_ra>
